<compile_context>
chip_gen: v7x
topology: tpu7x:2x2x1
jax: 0.10.0
libtpu: 0.0.40
codegen_flags: <defaults>
</compile_context>

<pallas_src>
import functools

import jax
import jax.numpy as jnp
import numpy as np
from jax.experimental import pallas as pl
from jax.experimental.pallas import tpu as pltpu

LANE = 128
BIAS_ROWS = 8  # bias stored in row 0 of an 8-row block to keep 8-alignment


def _round_up(x, m):
    return ((x + m - 1) // m) * m


# ----------------------------- Fused Pallas kernel ---------------------------

def _fused_forward_kernel(x_ref, blob_ref, o_ref, *, n_enc, enc_tanh, ff_tanh,
                          width):
    """x_ref:   (1, W)     packed [img | sg | per | 0...] input row.
    blob_ref:   (rows, W)  packed parameters:
                  per encoder layer:      W rows weight, 8 rows bias
                  feed-forward layer 0:   W rows W_x, W rows W_sgper, 8 rows b
                  remaining ff layers:    W rows weight, 8 rows bias
    All slices below are static (Python ints), 8-aligned, full-lane-width.
    Activations stay in vregs for the whole forward; padded lanes remain zero
    throughout (zero weight rows/cols, zero bias lanes, tanh(0)=0)."""
    W = width
    x_in = x_ref[...]                           # (1, W)
    x = x_in
    off = 0

    # ---- image embedding encoder ----
    # First encoder weight only has nonzero rows for the img lanes, so the
    # sg/per lanes of the packed input row contribute nothing.
    for i in range(n_enc):
        w = blob_ref[off:off + W, :]
        b = blob_ref[off + W:off + W + 1, :]
        off += W + BIAS_ROWS
        x = jnp.dot(x, w, preferred_element_type=jnp.float32) + b
        if enc_tanh[i]:
            x = jnp.tanh(x)

    # ---- fused concat + first feed-forward layer ----
    # concat(x, sg, per) @ W0 == x @ W0_x + in_row @ W0_sgper
    w_x = blob_ref[off:off + W, :]
    w_sp = blob_ref[off + W:off + 2 * W, :]
    b0 = blob_ref[off + 2 * W:off + 2 * W + 1, :]
    off += 2 * W + BIAS_ROWS
    y = (jnp.dot(x, w_x, preferred_element_type=jnp.float32)
         + jnp.dot(x_in, w_sp, preferred_element_type=jnp.float32)
         + b0)
    if ff_tanh[0]:
        y = jnp.tanh(y)

    # ---- remaining feed-forward layers ----
    for i in range(1, len(ff_tanh)):
        w = blob_ref[off:off + W, :]
        b = blob_ref[off + W:off + W + 1, :]
        off += W + BIAS_ROWS
        y = jnp.dot(y, w, preferred_element_type=jnp.float32) + b
        if ff_tanh[i]:
            y = jnp.tanh(y)

    o_ref[...] = y.astype(o_ref.dtype)          # single lane-dense (1, W) store


# --------------------- Layer structure (mirrors __init__) --------------------

def encoder_layer_dims(img_sz, reduced_sz, hidden):
    """(in, out, tanh) per layer — replicates the PyTorch indexing exactly."""
    dims = []
    n = len(hidden)
    for i in range(n):
        in_d = img_sz if i == 0 else hidden[i]
        out_d = reduced_sz if i == n - 1 else hidden[i + 1]
        dims.append((in_d, out_d, True))            # Tanh after every layer
    if n == 0:
        dims.append((img_sz, reduced_sz, True))
    return dims


def feedforward_layer_dims(n_inputs, num_classes, hidden):
    dims = []
    n = len(hidden)
    for i in range(n):
        in_d = n_inputs if i == 0 else hidden[i]
        out_d = num_classes if i == n - 1 else hidden[i + 1]
        dims.append((in_d, out_d, i != n - 1))      # no Tanh after last layer
    if n == 0:
        dims.append((n_inputs, num_classes, False))
    return dims


def init_params(key, layer_dims):
    """Deterministic torch.nn.Linear-style init: U(-1/sqrt(in), 1/sqrt(in)).
    Stored torch-style as (out, in) weights + (out,) biases; the fused-kernel
    prep below transposes/pads/packs ONCE."""
    params = []
    for (in_d, out_d, _) in layer_dims:
        key, kw, kb = jax.random.split(key, 3)
        bound = 1.0 / np.sqrt(in_d)
        w = jax.random.uniform(kw, (out_d, in_d), jnp.float32, -bound, bound)
        b = jax.random.uniform(kb, (out_d,), jnp.float32, -bound, bound)
        params.append((w, b))
    return key, params


# ------------------ One-time parameter prep for the fused kernel -------------

def prepare_fused_params(enc_dims, enc_params, ff_dims, ff_params,
                         reduced_sz, sg_size, n_per, num_classes):
    """Pack every weight/bias into one lane-dense (rows, W) f32 blob.

    - Weights are transposed to (in, out) and zero-padded to (W, W).
    - Biases go in row 0 of an 8-row zero block (keeps all offsets 8-aligned).
    - The first feed-forward weight is split row-wise; the sg/per rows are
      placed at the sg/per lane offsets of the packed input row so the concat
      folds into two dots on existing vregs.
    """
    img_sz = enc_dims[0][0]
    n_in_packed = img_sz + sg_size + n_per
    dims_all = [n_in_packed]
    for (i_d, o_d, _) in list(enc_dims) + list(ff_dims):
        dims_all += [i_d, o_d]
    W = max(LANE, _round_up(max(dims_all), LANE))

    def w_block(w_t, row_offset=0):
        blk = np.zeros((W, W), np.float32)
        blk[row_offset:row_offset + w_t.shape[0], :w_t.shape[1]] = w_t
        return blk

    def b_block(b):
        blk = np.zeros((BIAS_ROWS, W), np.float32)
        blk[0, :b.shape[0]] = b
        return blk

    blocks = []

    # encoder layers
    for (w, b) in enc_params:
        wt = np.asarray(w, np.float32).T                 # (in, out)
        blocks.append(w_block(wt))
        blocks.append(b_block(np.asarray(b, np.float32)))

    # feed-forward layer 0: row-split for the fused concat
    w0, b0 = ff_params[0]
    w0t = np.asarray(w0, np.float32).T                   # (n_ff_in, out0)
    w_x = w0t[:reduced_sz, :]                            # reads encoder output
    w_sgper = w0t[reduced_sz:, :]                        # reads sg|per of input row
    blocks.append(w_block(w_x))                          # rows 0..reduced-1
    blocks.append(w_block(w_sgper, row_offset=img_sz))   # rows img_sz..img_sz+sg+per-1
    blocks.append(b_block(np.asarray(b0, np.float32)))

    # remaining feed-forward layers
    for (w, b) in ff_params[1:]:
        wt = np.asarray(w, np.float32).T
        blocks.append(w_block(wt))
        blocks.append(b_block(np.asarray(b, np.float32)))

    blob = jax.device_put(jnp.asarray(np.concatenate(blocks, axis=0)))

    enc_tanh = tuple(t for (_, _, t) in enc_dims)
    ff_tanh = tuple(t for (_, _, t) in ff_dims)

    n_weight_blocks = len(enc_dims) + 2 + (len(ff_dims) - 1)
    cost = pl.CostEstimate(
        flops=2 * W * W * n_weight_blocks,
        transcendentals=W * (sum(enc_tanh) + sum(ff_tanh)),
        bytes_accessed=int(blob.size) * 4 + 2 * W * 4,
    )

    return {
        "blob": blob,
        "width": W,
        "n_enc": len(enc_dims),
        "enc_tanh": enc_tanh,
        "ff_tanh": ff_tanh,
        "num_classes": num_classes,
        "n_in_packed": n_in_packed,
        "cost_estimate": cost,
    }


# ------------------------------- Forward --------------------------------------

def linear_classifier_forward(img_emb, scene_graph_emb, peripheral, fused):
    W = fused["width"]
    x = jnp.concatenate([jnp.ravel(img_emb),
                         jnp.ravel(scene_graph_emb),
                         jnp.ravel(peripheral)]).astype(jnp.float32)
    x_row = jnp.pad(x, (0, W - fused["n_in_packed"])).reshape(1, W)

    vmem_spec = pl.BlockSpec(memory_space=pltpu.MemorySpace.VMEM)
    out = pl.pallas_call(
        functools.partial(_fused_forward_kernel,
                          n_enc=fused["n_enc"],
                          enc_tanh=fused["enc_tanh"],
                          ff_tanh=fused["ff_tanh"],
                          width=W),
        out_shape=jax.ShapeDtypeStruct((1, W), jnp.float32),
        in_specs=[vmem_spec, vmem_spec],
        out_specs=vmem_spec,
        cost_estimate=fused["cost_estimate"],
    )(x_row, fused["blob"])
    return out[0, :fused["num_classes"]]


def reference_forward(img_emb, scene_graph_emb, peripheral,
                      enc_dims, enc_params, ff_dims, ff_params):
    x = img_emb
    for (w, b), (_, _, tanh) in zip(enc_params, enc_dims):
        x = x @ w.T + b
        if tanh:
            x = jnp.tanh(x)
    cat = jnp.concatenate([x, scene_graph_emb.reshape(-1), peripheral])
    y = cat
    for (w, b), (_, _, tanh) in zip(ff_params, ff_dims):
        y = y @ w.T + b
        if tanh:
            y = jnp.tanh(y)
    return y


# --------------------------------- Main ---------------------------------------

if __name__ == "__main__":
    # Module hyperparameters (small, consistent with the forward pass)
    imgEmbeddingSize = 32
    reducedImgEmbeddingSize = 16
    encoderHiddenLayers = [24, 24]
    sceneGraphEmbeddingShape = (2, 4)              # flattened -> 8
    sceneGraphEmbeddingSize = int(np.prod(sceneGraphEmbeddingShape))
    numClasses = 6
    n_peripheralInputs = 4
    feedForwardHiddenLayers = [16, 16]

    enc_dims = encoder_layer_dims(imgEmbeddingSize, reducedImgEmbeddingSize,
                                  encoderHiddenLayers)
    n_ff_inputs = (reducedImgEmbeddingSize + sceneGraphEmbeddingSize
                   + n_peripheralInputs)
    ff_dims = feedforward_layer_dims(n_ff_inputs, numClasses,
                                     feedForwardHiddenLayers)

    key = jax.random.PRNGKey(0)
    key, enc_params = init_params(key, enc_dims)
    key, ff_params = init_params(key, ff_dims)

    fused = prepare_fused_params(enc_dims, enc_params, ff_dims, ff_params,
                                 reducedImgEmbeddingSize,
                                 sceneGraphEmbeddingSize,
                                 n_peripheralInputs, numClasses)

    key, k1, k2, k3 = jax.random.split(key, 4)
    img_emb = jax.random.normal(k1, (imgEmbeddingSize,), jnp.float32)
    scene_graph_emb = jax.random.normal(k2, sceneGraphEmbeddingShape, jnp.float32)
    peripheral = jax.random.normal(k3, (n_peripheralInputs,), jnp.float32)

    out = linear_classifier_forward(img_emb, scene_graph_emb, peripheral, fused)
    out = jax.block_until_ready(out)

    ref = reference_forward(img_emb, scene_graph_emb, peripheral,
                            enc_dims, enc_params, ff_dims, ff_params)
    np.testing.assert_allclose(np.asarray(out), np.asarray(ref),
                               rtol=1e-4, atol=1e-4)
    assert out.shape == (numClasses,)
    print("KERNEL_OK")
</pallas_src>

<mosaic_0001>
module attributes {stable_mosaic.version = 11 : i64} {
  func.func @_fused_forward_kernel(%arg0: memref<1x128xf32, #tpu.memory_space<vmem>>, %arg1: memref<672x128xf32, #tpu.memory_space<vmem>>, %arg2: memref<1x128xf32, #tpu.memory_space<vmem>>) attributes {dimension_semantics = [], scalar_prefetch = 0 : i64, scratch_operands = 0 : i64, tpu.core_type = #tpu.core_type<tc>} {
    %c0 = arith.constant 0 : index
    %c0_0 = arith.constant 0 : index
    %0 = vector.load %arg0[%c0, %c0_0] : memref<1x128xf32, #tpu.memory_space<vmem>>, vector<1x128xf32>
    %c0_1 = arith.constant 0 : index
    %c0_2 = arith.constant 0 : index
    %1 = vector.load %arg1[%c0_1, %c0_2] : memref<672x128xf32, #tpu.memory_space<vmem>>, vector<128x128xf32>
    %c128 = arith.constant 128 : index
    %c0_3 = arith.constant 0 : index
    %2 = vector.load %arg1[%c128, %c0_3] : memref<672x128xf32, #tpu.memory_space<vmem>>, vector<1x128xf32>
    %cst = arith.constant dense<0.000000e+00> : vector<1x128xf32>
    %3 = tpu.matmul %0, %1, %cst {dimension_numbers = #tpu.dot_dimension_numbers<[1], [0], [0], [1], [0, 0, 1, 1], [], []>} : vector<1x128xf32>, vector<128x128xf32>, vector<1x128xf32> -> vector<1x128xf32>
    %4 = arith.addf %3, %2 : vector<1x128xf32>
    %5 = math.tanh %4 : vector<1x128xf32>
    %c136 = arith.constant 136 : index
    %c0_4 = arith.constant 0 : index
    %6 = vector.load %arg1[%c136, %c0_4] : memref<672x128xf32, #tpu.memory_space<vmem>>, vector<128x128xf32>
    %c264 = arith.constant 264 : index
    %c0_5 = arith.constant 0 : index
    %7 = vector.load %arg1[%c264, %c0_5] : memref<672x128xf32, #tpu.memory_space<vmem>>, vector<1x128xf32>
    %cst_6 = arith.constant dense<0.000000e+00> : vector<1x128xf32>
    %8 = tpu.matmul %5, %6, %cst_6 {dimension_numbers = #tpu.dot_dimension_numbers<[1], [0], [0], [1], [0, 0, 1, 1], [], []>} : vector<1x128xf32>, vector<128x128xf32>, vector<1x128xf32> -> vector<1x128xf32>
    %9 = arith.addf %8, %7 : vector<1x128xf32>
    %10 = math.tanh %9 : vector<1x128xf32>
    %c272 = arith.constant 272 : index
    %c0_7 = arith.constant 0 : index
    %11 = vector.load %arg1[%c272, %c0_7] : memref<672x128xf32, #tpu.memory_space<vmem>>, vector<128x128xf32>
    %c400 = arith.constant 400 : index
    %c0_8 = arith.constant 0 : index
    %12 = vector.load %arg1[%c400, %c0_8] : memref<672x128xf32, #tpu.memory_space<vmem>>, vector<128x128xf32>
    %c528 = arith.constant 528 : index
    %c0_9 = arith.constant 0 : index
    %13 = vector.load %arg1[%c528, %c0_9] : memref<672x128xf32, #tpu.memory_space<vmem>>, vector<1x128xf32>
    %cst_10 = arith.constant dense<0.000000e+00> : vector<1x128xf32>
    %14 = tpu.matmul %10, %11, %cst_10 {dimension_numbers = #tpu.dot_dimension_numbers<[1], [0], [0], [1], [0, 0, 1, 1], [], []>} : vector<1x128xf32>, vector<128x128xf32>, vector<1x128xf32> -> vector<1x128xf32>
    %cst_11 = arith.constant dense<0.000000e+00> : vector<1x128xf32>
    %15 = tpu.matmul %0, %12, %cst_11 {dimension_numbers = #tpu.dot_dimension_numbers<[1], [0], [0], [1], [0, 0, 1, 1], [], []>} : vector<1x128xf32>, vector<128x128xf32>, vector<1x128xf32> -> vector<1x128xf32>
    %16 = arith.addf %14, %15 : vector<1x128xf32>
    %17 = arith.addf %16, %13 : vector<1x128xf32>
    %18 = math.tanh %17 : vector<1x128xf32>
    %c536 = arith.constant 536 : index
    %c0_12 = arith.constant 0 : index
    %19 = vector.load %arg1[%c536, %c0_12] : memref<672x128xf32, #tpu.memory_space<vmem>>, vector<128x128xf32>
    %c664 = arith.constant 664 : index
    %c0_13 = arith.constant 0 : index
    %20 = vector.load %arg1[%c664, %c0_13] : memref<672x128xf32, #tpu.memory_space<vmem>>, vector<1x128xf32>
    %cst_14 = arith.constant dense<0.000000e+00> : vector<1x128xf32>
    %21 = tpu.matmul %18, %19, %cst_14 {dimension_numbers = #tpu.dot_dimension_numbers<[1], [0], [0], [1], [0, 0, 1, 1], [], []>} : vector<1x128xf32>, vector<128x128xf32>, vector<1x128xf32> -> vector<1x128xf32>
    %22 = arith.addf %21, %20 : vector<1x128xf32>
    %c0_15 = arith.constant 0 : index
    %c0_16 = arith.constant 0 : index
    %23 = vector.load %arg2[%c0_15, %c0_16] : memref<1x128xf32, #tpu.memory_space<vmem>>, vector<1x128xf32>
    tpu.vector_store %arg2[%c0_15, %c0_16], %22 {strides = array<i32>} : memref<1x128xf32, #tpu.memory_space<vmem>>, vector<1x128xf32>,
    return
  }
}

</mosaic_0001>

<bundles_post_ra>
// kernel: tpu_custom_call.1
= control target key start
LH: loop header
LB: loop body
LE: loop exit
PB: predicated region body
PF: predicated region fallthrough
CT: control target
= control target key end

     0   :  { %7 = vsyncpa [#allocation3], 0  ;;  %s1080_s0 = inlined_call_operand.hbm [shape: f32[1,128], index: 0, kind: input, shape index: {}]   ;;  %s1081_s1 = inlined_call_operand.hbm [shape: f32[672,128], index: 1, kind: input, shape index: {}]   ;;  %s1082_s2 = inlined_call_operand.hbm [shape: f32[1,128], index: 2, kind: output, shape index: {}]  }
   0x1   :  { %8 = vsyncpa [#allocation6], 0 }
   0x2   :  { %9 = vsyncpa [#allocation4], 0  ;;  %s960_s9 = smov [#allocation2]   ;;  %s961_s11 = smov [#allocation5]  }
   0x3   :  { %s16_s10 = sshll.u32 %s960_s9, 4  ;;  %s25_s12 = sshll.u32 %s961_s11, 4  ;;  %s17_s10 = int_to_ptr.vmem [resolvable:$true] %s16_s10  ;;  %s983_s12 = int_to_ptr.vmem [resolvable:$true] %s25_s12 }
   0x4   :  { %s888_s15 = scalar_lea.hbm %s1080_s0, 16 }
   0x5   :  { %p889_p0 = scmp.ne.s32.totalorder %s1080_s0, %s888_s15  ;;  %p892_p1 = scmp.lt.u32.totalorder %s888_s15, %s1080_s0 }
   0x7   :  { %p894_p2 = pnand %p892_p1, %p889_p0 }
   0x9   :  { %897 = shalt.err (!%p894_p2)
}
   0xa   :  { %s898_s20 = scalar_lea.vmem %s17_s10, 16  ;;  %s902_s21 = scalar_lea.vmem %s17_s10, 32 }
   0xb   :  { %p899_p3 = scmp.ne.s32.totalorder %s17_s10, %s898_s20  ;;  %p903_p4 = scmp.lt.s32.totalorder %s17_s10, %s17_s10 }
   0xc   :  { %p904_p5 = scmp.lt.s32.totalorder %s902_s21, %s898_s20 }
   0xe   :  { %p905_p6 = por %p904_p5, %p903_p4 }
  0x10   :  { %p906_p7 = pnand %p905_p6, %p899_p3 }
  0x12   :  { %909 = shalt.err (!%p906_p7)
}
  0x13   :  { %19 = dma.hbm_to_vmem [thread:$0]  %s1080_s0, 16, %s17_s10, [#allocation3]  }
  0x14   :  { %s910_s26 = scalar_lea.hbm %s1081_s1, 10752 }
  0x15   :  { %p911_p8 = scmp.ne.s32.totalorder %s1081_s1, %s910_s26  ;;  %p914_p9 = scmp.lt.u32.totalorder %s910_s26, %s1081_s1 }
  0x17   :  { %p916_p10 = pnand %p914_p9, %p911_p8 }
  0x19   :  { %919 = shalt.err (!%p916_p10)
}
  0x1a   :  { %s920_s3 = scalar_lea.vmem %s983_s12, 10752  ;;  %p925_p12 = scmp.lt.s32.totalorder %s983_s12, %s983_s12 }
  0x1b   :  { %p921_p11 = scmp.ne.s32.totalorder %s983_s12, %s920_s3  ;;  %p926_p13 = scmp.lt.s32.totalorder %s920_s3, %s920_s3 }
  0x1d   :  { %p927_p0 = por %p926_p13, %p925_p12 }
  0x1f   :  { %p928_p1 = pnand %p927_p0, %p921_p11 }
  0x21   :  { %931 = shalt.err (!%p928_p1)
}
  0x22   :  { %s962_s0 = smov 128   ;;  %s963_s4 = smov 8  }
  0x23   :  { %31 = dma.hbm_to_vmem [thread:$0]  %s1081_s1, 10752, %s983_s12, [#allocation6], %s962_s0, %s962_s0, %s963_s4  }
  0x24   :  { %954 = dma.done.wait [#allocation3], 16  }
  0x25   :  { %955 = vsyncadd [#allocation3], 4294967280 }
  0x26   :  { %956 = dma.done.wait [#allocation6], 10752  }
  0x27   :  { %957 = vsyncadd [#allocation6], 4294956544  ;;  %v964_v0 = vmov 0.0|0.0   ;;  %vm965_vm0 = vmmov 0   ;;  %v966_v1 = vmov 0.0   ;;  %v39_v2 = vld [vmem:[#allocation5] sm:$0xff] }
  0x28   :  { %754 = vmatprep.subr.bf16.mxu0 %v964_v0  ;;  %611 = vmatprep.mubr.msk.f32.mxu0 %vm965_vm0, %v966_v1  ;;  %v40_v3 = vld [vmem:[#allocation5 + $0x8] sm:$0xff]  ;;  %v41_v4 = vld [vmem:[#allocation5 + $0x10] sm:$0xff]  ;;  %v42_v6 = vld [vmem:[#allocation5 + $0x18] sm:$0xff]  ;;  %s967_s1 = smov [#allocation7]  }
  0x29   :  { %778 = vmatprep.subr.bf16.mxu1 %v964_v0  ;;  %646 = vmatprep.mubr.msk.f32.mxu1 %vm965_vm0, %v966_v1  ;;  %v755_v5 = vpack.c.bf16 %v40_v3, %v39_v2  ;;  %v758_v7 = vpack.c.bf16 %v42_v6, %v41_v4  ;;  %v43_v8 = vld [vmem:[#allocation5 + $0x20] sm:$0xff]  ;;  %v44_v9 = vld [vmem:[#allocation5 + $0x28] sm:$0xff]  ;;  %v128_v11 = vld [vmem:[#allocation5 + $0x90] sm:$0xff]  ;;  %s484_s7 = sshll.u32 %s967_s1, 4  ;;  %s485_s7 = int_to_ptr.vmem [resolvable:$true] %s484_s7 }
  0x2a   :  { %v127_v10 = vld [vmem:[#allocation5 + $0x88] sm:$0xff]  ;;  %v129_v12 = vld [vmem:[#allocation5 + $0x98] sm:$0xff]  ;;  %v130_v13 = vld [vmem:[#allocation5 + $0xa0] sm:$0xff]  ;;  %v761_v14 = vpack.c.bf16 %v44_v9, %v43_v8  ;;  %s932_s8 = scalar_lea.vmem %s485_s7, 16  ;;  %s936_s9 = scalar_lea.vmem %s485_s7, 32 }
  0x2b   :  { %756 = vmatpush3.bf16.msra.mxu0 %v755_v5  ;;  %v779_v15 = vpack.c.bf16 %v128_v11, %v127_v10  ;;  %v45_v16 = vld [vmem:[#allocation5 + $0x30] sm:$0xff]  ;;  %v46_v17 = vld [vmem:[#allocation5 + $0x38] sm:$0xff]  ;;  %v782_v18 = vpack.c.bf16 %v130_v13, %v129_v12  ;;  %v131_v19 = vld [vmem:[#allocation5 + $0xa8] sm:$0xff]  ;;  %p933_p2 = scmp.ne.s32.totalorder %s485_s7, %s932_s8  ;;  %p937_p3 = scmp.lt.s32.totalorder %s485_s7, %s485_s7 }
  0x2c   :  { %757 = vmatprep.subr.bf16.mxu0 %v964_v0  ;;  %v132_v20 = vld [vmem:[#allocation5 + $0xb0] sm:$0xff]  ;;  %v764_v21 = vpack.c.bf16 %v46_v17, %v45_v16  ;;  %v47_v22 = vld [vmem:[#allocation5 + $0x40] sm:$0xff]  ;;  %v48_v23 = vld [vmem:[#allocation5 + $0x48] sm:$0xff]  ;;  %p938_p4 = scmp.lt.s32.totalorder %s936_s9, %s932_s8 }
  0x2d   :  { %780 = vmatpush3.bf16.msra.mxu1 %v779_v15  ;;  %v785_v24 = vpack.c.bf16 %v132_v20, %v131_v19  ;;  %v133_v25 = vld [vmem:[#allocation5 + $0xb8] sm:$0xff]  ;;  %v134_v26 = vld [vmem:[#allocation5 + $0xc0] sm:$0xff]  ;;  %v767_v27 = vpack.c.bf16 %v48_v23, %v47_v22  ;;  %v49_v28 = vld [vmem:[#allocation5 + $0x50] sm:$0xff] }
  0x2e   :  { %781 = vmatprep.subr.bf16.mxu1 %v964_v0  ;;  %v50_v29 = vld [vmem:[#allocation5 + $0x58] sm:$0xff]  ;;  %v788_v30 = vpack.c.bf16 %v134_v26, %v133_v25  ;;  %v135_v31 = vld [vmem:[#allocation5 + $0xc8] sm:$0xff]  ;;  %v136_v32 = vld [vmem:[#allocation5 + $0xd0] sm:$0xff]  ;;  %p939_p5 = por %p938_p4, %p937_p3 }
  0x2f   :  { %759 = vmatpush3.bf16.msra.mxu0 %v758_v7  ;;  %v770_v33 = vpack.c.bf16 %v50_v29, %v49_v28  ;;  %v51_v34 = vld [vmem:[#allocation5 + $0x60] sm:$0xff]  ;;  %v52_v35 = vld [vmem:[#allocation5 + $0x68] sm:$0xff]  ;;  %v791_v36 = vpack.c.bf16 %v136_v32, %v135_v31  ;;  %v53_v38 = vld [vmem:[#allocation5 + $0x70] sm:$0xff] }
  0x30   :  { %760 = vmatprep.subr.bf16.mxu0 %v964_v0  ;;  %v773_v37 = vpack.c.bf16 %v52_v35, %v51_v34  ;;  %v54_v39 = vld [vmem:[#allocation5 + $0x78] sm:$0xff]  ;;  %v138_v43 = vld [vmem:[#allocation5 + $0xe0] sm:$0xff]  ;;  %v139_v45 = vld [vmem:[#allocation5 + $0xe8] sm:$0xff]  ;;  %p940_p6 = pnand %p939_p5, %p933_p2 }
  0x31   :  { %783 = vmatpush3.bf16.msra.mxu1 %v782_v18  ;;  %v776_v40 = vpack.c.bf16 %v54_v39, %v53_v38  ;;  %v1032_v41 = vld [vmem:[#allocation2] sm:$0x1]  ;;  %v140_v46 = vld [vmem:[#allocation5 + $0xf0] sm:$0xff]  ;;  %v142_v49 = vld [vmem:[#allocation5 + $0x100] sm:$0xff] }
  0x32   :  { %784 = vmatprep.subr.bf16.mxu1 %v964_v0  ;;  %v137_v42 = vld [vmem:[#allocation5 + $0xd8] sm:$0xff]  ;;  %v797_v47 = vpack.c.bf16 %v140_v46, %v139_v45  ;;  %v231_v51 = vld [vmem:[#allocation5 + $0x190] sm:$0xff]  ;;  %v233_v54 = vld [vmem:[#allocation5 + $0x1a0] sm:$0xff] }
  0x33   :  { %762 = vmatpush3.bf16.msra.mxu0 %v761_v14  ;;  %v794_v44 = vpack.c.bf16 %v138_v43, %v137_v42  ;;  %v141_v48 = vld [vmem:[#allocation5 + $0xf8] sm:$0xff]  ;;  %v234_v55 = vld [vmem:[#allocation5 + $0x1a8] sm:$0xff]  ;;  %v235_v57 = vld [vmem:[#allocation5 + $0x1b0] sm:$0xff] }
  0x34   :  { %763 = vmatprep.subr.bf16.mxu0 %v964_v0  ;;  %v800_v50 = vpack.c.bf16 %v142_v49, %v141_v48  ;;  %v232_v52 = vld [vmem:[#allocation5 + $0x198] sm:$0xff]  ;;  %v806_v56 = vpack.c.bf16 %v234_v55, %v233_v54  ;;  %v237_v60 = vld [vmem:[#allocation5 + $0x1c0] sm:$0xff]  ;;  %v238_v61 = vld [vmem:[#allocation5 + $0x1c8] sm:$0xff] }
  0x35   :  { %786 = vmatpush3.bf16.msra.mxu1 %v785_v24  ;;  %v803_v53 = vpack.c.bf16 %v232_v52, %v231_v51  ;;  %v236_v58 = vld [vmem:[#allocation5 + $0x1b8] sm:$0xff]  ;;  %v812_v62 = vpack.c.bf16 %v238_v61, %v237_v60  ;;  %v239_v63 = vld [vmem:[#allocation5 + $0x1d0] sm:$0xff]  ;;  %v55_v4 = vld [vmem:[#allocation5 + $0x80] sm:$0x1] }
  0x36   :  { %787 = vmatprep.subr.bf16.mxu1 %v964_v0  ;;  %v809_v59 = vpack.c.bf16 %v236_v58, %v235_v57  ;;  %v240_v2 = vld [vmem:[#allocation5 + $0x1d8] sm:$0xff]  ;;  %v215_v8 = vld [vmem:[#allocation5 + $0x110] sm:$0xff]  ;;  %v217_v11 = vld [vmem:[#allocation5 + $0x120] sm:$0xff] }
  0x37   :  { %765 = vmatpush3.bf16.msra.mxu0 %v764_v21  ;;  %v815_v3 = vpack.c.bf16 %v240_v2, %v239_v63  ;;  %v216_v9 = vld [vmem:[#allocation5 + $0x118] sm:$0xff]  ;;  %v218_v12 = vld [vmem:[#allocation5 + $0x128] sm:$0xff]  ;;  %v219_v15 = vld [vmem:[#allocation5 + $0x130] sm:$0xff] }
  0x38   :  { %766 = vmatprep.subr.bf16.mxu0 %v964_v0  ;;  %v827_v10 = vpack.c.bf16 %v216_v9, %v215_v8  ;;  %v830_v14 = vpack.c.bf16 %v218_v12, %v217_v11  ;;  %v220_v16 = vld [vmem:[#allocation5 + $0x138] sm:$0xff]  ;;  %v221_v18 = vld [vmem:[#allocation5 + $0x140] sm:$0xff]  ;;  %v222_v19 = vld [vmem:[#allocation5 + $0x148] sm:$0xff] }
  0x39   :  { %789 = vmatpush3.bf16.msra.mxu1 %v788_v30  ;;  %v833_v17 = vpack.c.bf16 %v220_v16, %v219_v15  ;;  %v836_v20 = vpack.c.bf16 %v222_v19, %v221_v18  ;;  %v223_v21 = vld [vmem:[#allocation5 + $0x150] sm:$0xff]  ;;  %v224_v22 = vld [vmem:[#allocation5 + $0x158] sm:$0xff]  ;;  %v241_v24 = vld [vmem:[#allocation5 + $0x1e0] sm:$0xff] }
  0x3a   :  { %790 = vmatprep.subr.bf16.mxu1 %v964_v0  ;;  %v839_v23 = vpack.c.bf16 %v224_v22, %v223_v21  ;;  %v242_v25 = vld [vmem:[#allocation5 + $0x1e8] sm:$0xff]  ;;  %v243_v30 = vld [vmem:[#allocation5 + $0x1f0] sm:$0xff]  ;;  %v244_v31 = vld [vmem:[#allocation5 + $0x1f8] sm:$0xff] }
  0x3b   :  { %768 = vmatpush3.bf16.msra.mxu0 %v767_v27  ;;  %v818_v26 = vpack.c.bf16 %v242_v25, %v241_v24  ;;  %v225_v27 = vld [vmem:[#allocation5 + $0x160] sm:$0xff]  ;;  %v226_v28 = vld [vmem:[#allocation5 + $0x168] sm:$0xff]  ;;  %v227_v32 = vld [vmem:[#allocation5 + $0x170] sm:$0xff] }
  0x3c   :  { %769 = vmatprep.subr.bf16.mxu0 %v964_v0  ;;  %v842_v29 = vpack.c.bf16 %v226_v28, %v225_v27  ;;  %v228_v34 = vld [vmem:[#allocation5 + $0x178] sm:$0xff]  ;;  %v245_v35 = vld [vmem:[#allocation5 + $0x200] sm:$0xff]  ;;  %v230_v39 = vld [vmem:[#allocation5 + $0x188] sm:$0xff] }
  0x3d   :  { %792 = vmatpush3.bf16.msra.mxu1 %v791_v36  ;;  %v246_v36 = vld [vmem:[#allocation5 + $0x208] sm:$0xff]  ;;  %v229_v38 = vld [vmem:[#allocation5 + $0x180] sm:$0xff]  ;;  %v390_v43 = vld [vmem:[#allocation5 + $0x218] sm:$0xff] }
  0x3e   :  { %793 = vmatprep.subr.bf16.mxu1 %v964_v0  ;;  %v848_v42 = vpack.c.bf16 %v230_v39, %v229_v38  ;;  %v392_v45 = vld [vmem:[#allocation5 + $0x228] sm:$0xff]  ;;  %v394_v49 = vld [vmem:[#allocation5 + $0x238] sm:$0xff]  ;;  %v401_v2 = vld [vmem:[#allocation5 + $0x270] sm:$0xff] }
  0x3f   :  { %771 = vmatpush3.bf16.msra.mxu0 %v770_v33  ;;  %v821_v33 = vpack.c.bf16 %v244_v31, %v243_v30  ;;  %v396_v52 = vld [vmem:[#allocation5 + $0x248] sm:$0xff]  ;;  %v398_v58 = vld [vmem:[#allocation5 + $0x258] sm:$0xff]  ;;  %v405_v8 = vld [vmem:[#allocation5 + $0x290] sm:$0xff] }
  0x40   :  { %772 = vmatprep.subr.bf16.mxu0 %v964_v0  ;;  %v400_v63 = vld [vmem:[#allocation5 + $0x268] sm:$0xff]  ;;  %v406_v16 = vld [vmem:[#allocation5 + $0x298] sm:$0x1] }
  0x41   :  { %795 = vmatpush3.bf16.msra.mxu1 %v794_v44  ;;  %v391_v44 = vld [vmem:[#allocation5 + $0x220] sm:$0xff] }
  0x42   :  { %796 = vmatprep.subr.bf16.mxu1 %v964_v0  ;;  %v851_v46 = vpack.c.bf16 %v391_v44, %v390_v43 }
  0x43   :  { %774 = vmatpush3.bf16.msra.mxu0 %v773_v37  ;;  %v845_v37 = vpack.c.bf16 %v228_v34, %v227_v32 }
  0x44   :  { %775 = vmatprep.subr.bf16.mxu0 %v964_v0 }
  0x45   :  { %798 = vmatpush3.bf16.msra.mxu1 %v797_v47  ;;  %v393_v47 = vld [vmem:[#allocation5 + $0x230] sm:$0xff] }
  0x46   :  { %799 = vmatprep.subr.bf16.mxu1 %v964_v0  ;;  %v854_v48 = vpack.c.bf16 %v393_v47, %v392_v45 }
  0x47   :  { %777 = vmatpush3.bf16.msra.mxu0 %v776_v40  ;;  %v824_v40 = vpack.c.bf16 %v246_v36, %v245_v35 }
  0x48   :  { %802 = vmatprep.subr.bf16.mxu0 %v964_v0 }
  0x49   :  { %801 = vmatpush3.bf16.msra.mxu1 %v800_v50  ;;  %v395_v50 = vld [vmem:[#allocation5 + $0x240] sm:$0xff] }
  0x4a   :  { %612 = vmatmul.mubr.f32.vlgmr.msra.gmra.mrb[0].mxu0 %v1032_v41  ;;  %826 = vmatprep.subr.bf16.mxu1 %v964_v0  ;;  %v857_v51 = vpack.c.bf16 %v395_v50, %v394_v49 }
  0x4b   :  { %681 = vmatprep.mubr.msk.f32.mxu0 %vm965_vm0, %v966_v1  ;;  %804 = vmatpush3.bf16.msra.mxu0 %v803_v53 }
  0x4c   :  { %805 = vmatprep.subr.bf16.mxu0 %v964_v0 }
  0x4f   :  { %807 = vmatpush3.bf16.msra.mxu0 %v806_v56 }
  0x50   :  { %808 = vmatprep.subr.bf16.mxu0 %v964_v0 }
  0x53   :  { %810 = vmatpush3.bf16.msra.mxu0 %v809_v59  ;;  %v399_v59 = vld [vmem:[#allocation5 + $0x260] sm:$0xff] }
  0x54   :  { %811 = vmatprep.subr.bf16.mxu0 %v964_v0  ;;  %v863_v61 = vpack.c.bf16 %v399_v59, %v398_v58 }
  0x57   :  { %813 = vmatpush3.bf16.msra.mxu0 %v812_v62 }
  0x58   :  { %814 = vmatprep.subr.bf16.mxu0 %v964_v0 }
  0x5b   :  { %816 = vmatpush3.bf16.msra.mxu0 %v815_v3  ;;  %v866_v3 = vpack.c.bf16 %v401_v2, %v400_v63 }
  0x5c   :  { %817 = vmatprep.subr.bf16.mxu0 %v964_v0 }
  0x5f   :  { %819 = vmatpush3.bf16.msra.mxu0 %v818_v26 }
  0x60   :  { %820 = vmatprep.subr.bf16.mxu0 %v964_v0 }
  0x63   :  { %822 = vmatpush3.bf16.msra.mxu0 %v821_v33 }
  0x64   :  { %823 = vmatprep.subr.bf16.mxu0 %v964_v0 }
  0x67   :  { %825 = vmatpush3.bf16.msra.mxu0 %v824_v40 }
  0x68   :  { %850 = vmatprep.subr.bf16.mxu0 %v964_v0 }
  0x6a   :  { %682 = vmatmul.mubr.f32.vlgmr.msra.gmra.mrb[2].mxu0 %v1032_v41  ;;  %v397_v41 = vld [vmem:[#allocation5 + $0x250] sm:$0xff] }
  0x6b   :  { %751 = vmatprep.mubr.msk.f32.mxu0 %vm965_vm0, %v966_v1  ;;  %852 = vmatpush3.bf16.msra.mxu0 %v851_v46  ;;  %v860_v53 = vpack.c.bf16 %v397_v41, %v396_v52 }
  0x6c   :  { %853 = vmatprep.subr.bf16.mxu0 %v964_v0 }
  0x6f   :  { %855 = vmatpush3.bf16.msra.mxu0 %v854_v48 }
  0x70   :  { %856 = vmatprep.subr.bf16.mxu0 %v964_v0 }
  0x73   :  { %858 = vmatpush3.bf16.msra.mxu0 %v857_v51 }
  0x74   :  { %859 = vmatprep.subr.bf16.mxu0 %v964_v0 }
  0x77   :  { %861 = vmatpush3.bf16.msra.mxu0 %v860_v53 }
  0x78   :  { %862 = vmatprep.subr.bf16.mxu0 %v964_v0 }
  0x7b   :  { %864 = vmatpush3.bf16.msra.mxu0 %v863_v61 }
  0x7c   :  { %865 = vmatprep.subr.bf16.mxu0 %v964_v0 }
  0x7f   :  { %867 = vmatpush3.bf16.msra.mxu0 %v866_v3 }
  0x80   :  { %868 = vmatprep.subr.bf16.mxu0 %v964_v0 }
 0x11d   :  { %v122_v5 = vpop.f32.mrb[0].mxu0 }
 0x11e   :  { %v123_v6 = vadd.f32 %v122_v5, %v55_v4  ;;  %v613_v7 = vpop.f32.mrb[1].mxu0  ;;  %v402_v4 = vld [vmem:[#allocation5 + $0x278] sm:$0xff]  ;;  %v403_v5 = vld [vmem:[#allocation5 + $0x280] sm:$0xff] }
 0x11f   :  { %v404_v7 = vld [vmem:[#allocation5 + $0x288] sm:$0xff] }
 0x120   :  { %882 = vtanh.f32 %v123_v6  ;;  %v869_v6 = vpack.c.bf16 %v403_v5, %v402_v4  ;;  %v872_v9 = vpack.c.bf16 %v405_v8, %v404_v7 }
 0x122   :  { %870 = vmatpush3.bf16.msra.mxu0 %v869_v6 }
 0x123   :  { %871 = vmatprep.subr.bf16.mxu0 %v964_v0 }
 0x126   :  { %873 = vmatpush3.bf16.msra.mxu0 %v872_v9 }
 0x12a   :  { %v883_v13 = vpop.eup %882 }
 0x12b   :  { %647 = vmatmul.mubr.f32.vlgmr.msra.gmra.mrb[0].mxu1 %v883_v13 }
 0x12c   :  { %828 = vmatpush3.bf16.msra.mxu1 %v827_v10  ;;  %716 = vmatprep.mubr.msk.f32.mxu1 %vm965_vm0, %v966_v1  ;;  %v143_v1 = vld [vmem:[#allocation5 + $0x108] sm:$0x1]  ;;  %v247_v10 = vld [vmem:[#allocation5 + $0x210] sm:$0x1] }
 0x12d   :  { %829 = vmatprep.subr.bf16.mxu1 %v964_v0 }
 0x130   :  { %831 = vmatpush3.bf16.msra.mxu1 %v830_v14 }
 0x131   :  { %832 = vmatprep.subr.bf16.mxu1 %v964_v0 }
 0x134   :  { %834 = vmatpush3.bf16.msra.mxu1 %v833_v17 }
 0x135   :  { %835 = vmatprep.subr.bf16.mxu1 %v964_v0 }
 0x138   :  { %837 = vmatpush3.bf16.msra.mxu1 %v836_v20 }
 0x139   :  { %838 = vmatprep.subr.bf16.mxu1 %v964_v0 }
 0x13c   :  { %840 = vmatpush3.bf16.msra.mxu1 %v839_v23 }
 0x13d   :  { %841 = vmatprep.subr.bf16.mxu1 %v964_v0  ;;  %v314_v60 = vpop.f32.mrb[2].mxu0 }
 0x13e   :  { %v683_v62 = vpop.f32.mrb[3].mxu0 }
 0x140   :  { %843 = vmatpush3.bf16.msra.mxu1 %v842_v29 }
 0x141   :  { %844 = vmatprep.subr.bf16.mxu1 %v964_v0 }
 0x144   :  { %846 = vmatpush3.bf16.msra.mxu1 %v845_v37 }
 0x145   :  { %847 = vmatprep.subr.bf16.mxu1 %v964_v0 }
 0x148   :  { %849 = vmatpush3.bf16.msra.mxu1 %v848_v42 }
 0x1fe   :  { %v210_v54 = vpop.f32.mrb[0].mxu1 }
 0x1ff   :  { %v211_v55 = vadd.f32 %v210_v54, %v143_v1  ;;  %v648_v56 = vpop.f32.mrb[1].mxu1 }
 0x201   :  { %884 = vtanh.f32 %v211_v55 }
 0x20b   :  { %v885_v57 = vpop.eup %884 }
 0x20c   :  { %717 = vmatmul.mubr.f32.vlgmr.msra.gmra.mrb[2].mxu1 %v885_v57 }
 0x2df   :  { %v384_v11 = vpop.f32.mrb[2].mxu1 }
 0x2e0   :  { %v385_v12 = vadd.f32 %v384_v11, %v314_v60  ;;  %v718_v13 = vpop.f32.mrb[3].mxu1 }
 0x2e2   :  { %v388_v14 = vadd.f32 %v385_v12, %v247_v10 }
 0x2e4   :  { %886 = vtanh.f32 %v388_v14 }
 0x2ee   :  { %v887_v15 = vpop.eup %886 }
 0x2ef   :  { %752 = vmatmul.mubr.f32.vlgmr.msra.gmra.mrb[4].mxu0 %v887_v15 }
 0x3c2   :  { %v473_v17 = vpop.f32.mrb[4].mxu0 }
 0x3c3   :  { %v474_v18 = vadd.f32 %v473_v17, %v406_v16  ;;  %v753_v19 = vpop.f32.mrb[5].mxu0 }
 0x3c5   :  { %477 = vst [vmem:[#allocation7] sm:$0x1] %v474_v18 }
 0x3c6   :  { %943 = shalt.err (!%p940_p6)
}
 0x3c7   :  { %s944_s12 = scalar_lea.hbm %s1082_s2, 16 }
 0x3c8   :  { %p945_p7 = scmp.ne.s32.totalorder %s1082_s2, %s944_s12  ;;  %p948_p8 = scmp.lt.u32.totalorder %s944_s12, %s1082_s2 }
 0x3ca   :  { %p950_p9 = pnand %p948_p8, %p945_p7 }
 0x3cc   :  { %953 = shalt.err (!%p950_p9)
}
 0x3cd   :  { %487 = dma.vmem_to_hbm [thread:$0]  %s485_s7, 16, %s1082_s2, [#allocation4]  }
 0x3ce   :  { %958 = dma.done.wait [#allocation4], 16  }
 0x3cf   :  { %959 = vsyncadd [#allocation4], 4294967280 }
 0x3d0   :  { %491 = vsyncpa [#allocation3], 1 }
 0x3d1   :  { %492 = vsyncpa [#allocation6], 1 }
 0x3d2   :  { %493 = vsyncpa [#allocation4], 1 }

</bundles_post_ra>
